<compile_context>
chip_gen: v6e
topology: v6e:2x2x1
jax: 0.10.0
libtpu: 0.0.40
codegen_flags: <defaults>
</compile_context>

<pallas_src>
import functools
import math

import numpy as np

import jax
import jax.numpy as jnp
from jax import lax
from jax.experimental import pallas as pl
from jax.experimental.pallas import tpu as pltpu


def _cbcr_kernel(x_ref, w_ref, b_ref, a_ref, o_ref, *,
                 kernel_size, dilation, base, l_final, batch_tile, c_in,
                 pad_l, pad_r, compute_dtype, deep_matmul):
    """Fused conv(+folded BN) -> chomp(baked into offsets) -> PReLU.

    x_ref: (bt*C_in, L)            original dtype (batch tile packed on sublanes)
    w_ref: (C_out, K*C_in)         if deep_matmul else (K, C_out, C_in)
    b_ref: (C_out, 1) f32          BN-folded bias
    a_ref: (C_out, 1) f32          PReLU per-channel alpha
    o_ref: (C_out, bt*l_final)     lane-dense output slab
    """
    bt, K = batch_tile, kernel_size
    rows = bt * c_in

    # In-kernel cast (VPU slack) + in-kernel zero padding of the lane axis:
    # avoids the host-side pad/astype HBM passes of the previous version.
    x = x_ref[...].astype(compute_dtype)                       # (bt*C_in, L)
    parts = []
    if pad_l:
        parts.append(jnp.zeros((rows, pad_l), compute_dtype))
    parts.append(x)
    if pad_r:
        parts.append(jnp.zeros((rows, pad_r), compute_dtype))
    xp = parts[0] if len(parts) == 1 else jnp.concatenate(parts, axis=1)

    if deep_matmul:
        # C_in sublane-aligned: one (K*C_in, bt*l_final) im2col slab (batch
        # tile concatenated along the lane axis) -> a single deep MXU matmul.
        pieces = []
        for i in range(bt):
            xb = xp[i * c_in:(i + 1) * c_in, :]                # (C_in, l_pad)
            taps = [xb[:, base + t * dilation: base + t * dilation + l_final]
                    for t in range(K)]
            pieces.append(jnp.concatenate(taps, axis=0))       # (K*C_in, l_final)
        im2col = pieces[0] if bt == 1 else jnp.concatenate(pieces, axis=1)
        acc = jnp.dot(w_ref[...], im2col,
                      preferred_element_type=jnp.float32)      # (C_out, bt*l_final)
    else:
        # C_in not a multiple of the sublane packing: skip the misaligned
        # sublane concat; K accumulating matmuls, each (C_out,C_in)x(C_in,bt*L).
        acc = None
        for t in range(K):
            off = base + t * dilation
            tap = [xp[i * c_in:(i + 1) * c_in, off: off + l_final]
                   for i in range(bt)]
            tap = tap[0] if bt == 1 else jnp.concatenate(tap, axis=1)
            part = jnp.dot(w_ref[t], tap, preferred_element_type=jnp.float32)
            acc = part if acc is None else acc + part

    # Thin f32 epilogue: folded bias + PReLU, a single broadcast per grid step.
    y = acc + b_ref[...]
    y = jnp.where(y > 0, y, a_ref[...] * y)
    o_ref[...] = y.astype(o_ref.dtype)


def conv_batch_chomp_relu(x, w, b, gamma, beta, running_mean, running_var,
                          alpha, *, stride=1, dilation=1, padding=0,
                          eps=1e-5, batch_tile=None,
                          compute_dtype=jnp.bfloat16):
    """x: (N, C_in, L) -> (N, C_out, L_out - padding), in x.dtype.

    ReLU is the alpha == 0 special case of PReLU.  Pass compute_dtype=float32
    for full-precision matmuls (bf16 default feeds the MXU fast path).
    """
    assert stride == 1, "only stride=1 is supported (see TODO above)"
    N, C_in, L = x.shape
    C_out, c_in_w, K = w.shape
    assert c_in_w == C_in
    if padding > 0:
        # Module uses Chomp1d(padding, symm_chomp=True).
        assert padding % 2 == 0, "symmetric chomp requires even padding"

    l_out = L + 2 * padding - dilation * (K - 1)
    l_final = l_out - padding                      # symmetric chomp
    assert l_final > 0, "sequence too short for this padding/chomp config"
    chomp_lo = padding // 2

    # Bake the chomp into the tap offsets: surviving output column j, tap t
    # reads original input index j + chomp_lo + t*dilation - padding.
    lo = chomp_lo - padding
    hi = (l_final - 1 + chomp_lo) + (K - 1) * dilation - padding
    pad_l = max(0, -lo)
    pad_r = max(0, hi - (L - 1))
    base = lo + pad_l                              # first-tap offset, >= 0

    # Fold BatchNorm (inference running stats) into the conv weight/bias.
    # bf16 shares f32's exponent range, so folding the scale before the cast
    # does not change the relative rounding error of the weights.
    scale = gamma * lax.rsqrt(running_var + eps)                # (C_out,)
    w_f = (w * scale[:, None, None]).astype(jnp.float32)
    b_f = ((b - running_mean) * scale + beta).astype(jnp.float32)
    alpha = jnp.broadcast_to(jnp.asarray(alpha, jnp.float32).reshape(-1),
                             (C_out,))             # scalar PReLU also accepted

    # Pad C_out to a sublane multiple so the lane-dense output block tiles.
    c_pad = (-C_out) % 8
    c_out_p = C_out + c_pad
    if c_pad:
        w_f = jnp.pad(w_f, ((0, c_pad), (0, 0), (0, 0)))
        b_f = jnp.pad(b_f, (0, c_pad))
        alpha = jnp.pad(alpha, (0, c_pad))

    # --- batch tile selection ------------------------------------------------
    in_bytes = x.dtype.itemsize
    c_bytes = np.dtype(compute_dtype).itemsize
    per_elem = (C_in * L * in_bytes                      # x block
                + c_out_p * l_final * in_bytes           # out block
                + (K * C_in * c_bytes + 8 * c_out_p) * l_final)   # in-kernel temps
    if batch_tile is None:
        # Aim for MiB-scale blocks (amortize ~0.35 us/step), cap the unroll.
        batch_tile = max(1, min(64, (2 << 20) // max(per_elem, 1)))
        if N >= 2:                                       # keep grid >= 2 (v7x: 2 TCs)
            batch_tile = min(batch_tile, -(-N // 2))
    bt = max(1, min(batch_tile, N))
    # Round bt up so the (bt*C_in, L) input block is sublane-tileable.
    unit = 8 // math.gcd(C_in, 8)
    bt = -(-bt // unit) * unit

    n_pad = (-N) % bt
    n_total = N + n_pad
    n_blocks = n_total // bt
    x_p = jnp.pad(x, ((0, n_pad), (0, 0), (0, 0))) if n_pad else x
    x2 = x_p.reshape(n_total * C_in, L)                  # free contiguous reshape

    # Sublane-packing alignment picks single-deep-matmul vs K tap matmuls.
    pack = 8 * (4 // c_bytes)                            # 8 for f32, 16 for bf16
    deep = (C_in % pack) == 0
    if deep:
        # (C_out, C_in, K) -> (C_out, K*C_in), columns ordered [tap, c_in]
        # to match the kernel's im2col stacking order.
        w_in = jnp.transpose(w_f, (0, 2, 1)).reshape(c_out_p, K * C_in)
        w_spec = pl.BlockSpec((c_out_p, K * C_in), lambda n: (0, 0))
    else:
        w_in = jnp.transpose(w_f, (2, 0, 1))             # (K, C_out, C_in)
        w_spec = pl.BlockSpec((K, c_out_p, C_in), lambda n: (0, 0, 0))
    w_in = w_in.astype(compute_dtype)

    bias = b_f.reshape(c_out_p, 1)
    alph = alpha.reshape(c_out_p, 1)

    # VMEM budget: double-buffered (x + out) blocks + weights + in-kernel temps,
    # sized against v7x's 64 MiB physical VMEM (~48 MiB practical ceiling).
    step_bytes = (2 * bt * C_in * L * in_bytes
                  + 2 * c_out_p * bt * l_final * in_bytes
                  + 2 * K * C_in * c_out_p * c_bytes
                  + bt * per_elem)
    vmem_limit = int(min(48 << 20, max(step_bytes + (2 << 20), 16 << 20)))

    kern = functools.partial(
        _cbcr_kernel, kernel_size=K, dilation=dilation, base=base,
        l_final=l_final, batch_tile=bt, c_in=C_in, pad_l=pad_l, pad_r=pad_r,
        compute_dtype=compute_dtype, deep_matmul=deep)

    out = pl.pallas_call(
        kern,
        out_shape=jax.ShapeDtypeStruct((n_blocks * c_out_p, bt * l_final),
                                       x.dtype),
        grid_spec=pltpu.PrefetchScalarGridSpec(
            num_scalar_prefetch=0,
            grid=(n_blocks,),
            in_specs=[
                pl.BlockSpec((bt * C_in, L), lambda n: (n, 0)),
                w_spec,
                pl.BlockSpec((c_out_p, 1), lambda n: (0, 0)),
                pl.BlockSpec((c_out_p, 1), lambda n: (0, 0)),
            ],
            out_specs=pl.BlockSpec((c_out_p, bt * l_final), lambda n: (n, 0)),
        ),
        compiler_params=pltpu.CompilerParams(
            dimension_semantics=("parallel",),
            vmem_limit_bytes=vmem_limit),
    )(x2, w_in, bias, alph)

    # Lane-dense slab -> (N, C_out, l_final): layout plumbing in the wrapper.
    out = out.reshape(n_blocks, c_out_p, bt, l_final)
    out = jnp.transpose(out, (0, 2, 1, 3)).reshape(n_total, c_out_p, l_final)
    return out[:N, :C_out, :]


def _reference(x, w, b, gamma, beta, mean, var, alpha, *, stride, dilation,
               padding, eps=1e-5):
    y = lax.conv_general_dilated(
        x, w, window_strides=(stride,), padding=[(padding, padding)],
        rhs_dilation=(dilation,), dimension_numbers=("NCH", "OIH", "NCH"))
    y = y + b[None, :, None]
    y = (y - mean[None, :, None]) * (gamma[None, :, None] *
                                     lax.rsqrt(var[None, :, None] + eps)) \
        + beta[None, :, None]
    if padding > 0:
        y = y[:, :, padding // 2: -(padding // 2)]
    return jnp.where(y > 0, y, alpha[None, :, None] * y)


def _run_case(*, N, C_in, C_out, L, K, dilation, batch_tile, compute_dtype, tol):
    padding = (K - 1) * dilation
    key = jax.random.PRNGKey(0)
    ks = jax.random.split(key, 7)
    x = jax.random.normal(ks[0], (N, C_in, L), dtype=jnp.float32)
    w = jax.random.normal(ks[1], (C_out, C_in, K), dtype=jnp.float32) * 0.3
    b = jax.random.normal(ks[2], (C_out,), dtype=jnp.float32) * 0.1
    gamma = 1.0 + 0.1 * jax.random.normal(ks[3], (C_out,), dtype=jnp.float32)
    beta = 0.1 * jax.random.normal(ks[4], (C_out,), dtype=jnp.float32)
    mean = 0.1 * jax.random.normal(ks[5], (C_out,), dtype=jnp.float32)
    var = jnp.abs(1.0 + 0.1 * jax.random.normal(ks[6], (C_out,),
                                                dtype=jnp.float32))
    alpha = jnp.full((C_out,), 0.25, dtype=jnp.float32)   # PReLU default init

    out = conv_batch_chomp_relu(
        x, w, b, gamma, beta, mean, var, alpha,
        stride=1, dilation=dilation, padding=padding,
        batch_tile=batch_tile, compute_dtype=compute_dtype)
    out = jax.block_until_ready(out)

    ref = _reference(x, w, b, gamma, beta, mean, var, alpha,
                     stride=1, dilation=dilation, padding=padding)
    assert out.shape == ref.shape, (out.shape, ref.shape)
    err = float(jnp.max(jnp.abs(out - ref)))
    assert err < tol, err


if __name__ == "__main__":
    # Module config example: n_inputs=4, n_outputs=8, kernel_size=3, stride=1,
    # dilation=1, padding=(kernel_size-1)*dilation, relu_type='prelu'.
    # C_in=4 is not sublane-aligned -> K-accumulating-matmul path, bf16 MXU.
    _run_case(N=8, C_in=4, C_out=8, L=16, K=3, dilation=1, batch_tile=4,
              compute_dtype=jnp.bfloat16, tol=5e-2)
    # Aligned C_in -> single deep im2col matmul path; f32 compute, dilation=2,
    # auto batch_tile selection.
    _run_case(N=4, C_in=16, C_out=32, L=32, K=3, dilation=2, batch_tile=None,
              compute_dtype=jnp.float32, tol=5e-2)
    print("KERNEL_OK")
</pallas_src>

<mosaic_0001>
module attributes {stable_mosaic.version = 11 : i64} {
  func.func @_cbcr_kernel(%arg0: i32, %arg1: memref<16x16xf32, #tpu.memory_space<vmem>>, %arg2: memref<3x8x4xbf16, #tpu.memory_space<vmem>>, %arg3: memref<8x1xf32, #tpu.memory_space<vmem>>, %arg4: memref<8x1xf32, #tpu.memory_space<vmem>>, %arg5: memref<8x64xf32, #tpu.memory_space<vmem>>) attributes {dimension_semantics = [#tpu.dimension_semantics<parallel>], iteration_bounds = array<i64: 2>, scalar_prefetch = 0 : i64, scratch_operands = 0 : i64, tpu.core_type = #tpu.core_type<tc>, window_params = [{transform_indices = @transform_0, window_bounds = array<i64: 16, 16>}, {pipeline_mode = #tpu.pipeline_mode<synchronous>, transform_indices = @transform_1, window_bounds = array<i64: 3, 8, 4>}, {pipeline_mode = #tpu.pipeline_mode<synchronous>, transform_indices = @transform_2, window_bounds = array<i64: 8, 1>}, {pipeline_mode = #tpu.pipeline_mode<synchronous>, transform_indices = @transform_3, window_bounds = array<i64: 8, 1>}, {transform_indices = @transform_4, window_bounds = array<i64: 8, 64>}]} {
    %c0 = arith.constant 0 : index
    %c0_0 = arith.constant 0 : index
    %0 = vector.load %arg1[%c0, %c0_0] : memref<16x16xf32, #tpu.memory_space<vmem>>, vector<16x16xf32>
    %1 = arith.truncf %0 : vector<16x16xf32> to vector<16x16xbf16>
    %cst = arith.constant 0.000000e+00 : bf16
    %2 = vector.broadcast %cst : bf16 to vector<16x1xbf16>
    %cst_1 = arith.constant 0.000000e+00 : bf16
    %3 = vector.broadcast %cst_1 : bf16 to vector<16x1xbf16>
    %4 = tpu.concatenate %2, %1, %3 in 1 : vector<16x1xbf16>, vector<16x16xbf16>, vector<16x1xbf16> -> vector<16x18xbf16>
    %5 = vector.extract_strided_slice %4 {offsets = [0, 0], sizes = [4, 16], strides = [1, 1]} : vector<16x18xbf16> to vector<4x16xbf16>
    %6 = vector.extract_strided_slice %4 {offsets = [4, 0], sizes = [4, 16], strides = [1, 1]} : vector<16x18xbf16> to vector<4x16xbf16>
    %7 = vector.extract_strided_slice %4 {offsets = [8, 0], sizes = [4, 16], strides = [1, 1]} : vector<16x18xbf16> to vector<4x16xbf16>
    %8 = vector.extract_strided_slice %4 {offsets = [12, 0], sizes = [4, 16], strides = [1, 1]} : vector<16x18xbf16> to vector<4x16xbf16>
    %9 = tpu.concatenate %5, %6, %7, %8 in 1 : vector<4x16xbf16>, vector<4x16xbf16>, vector<4x16xbf16>, vector<4x16xbf16> -> vector<4x64xbf16>
    %c0_2 = arith.constant 0 : index
    %c0_3 = arith.constant 0 : index
    %c0_4 = arith.constant 0 : index
    %10 = vector.load %arg2[%c0_2, %c0_3, %c0_4] : memref<3x8x4xbf16, #tpu.memory_space<vmem>>, vector<1x8x4xbf16>
    %11 = vector.shape_cast %10 : vector<1x8x4xbf16> to vector<8x4xbf16>
    %cst_5 = arith.constant dense<0.000000e+00> : vector<8x64xf32>
    %12 = tpu.matmul %11, %9, %cst_5 {dimension_numbers = #tpu.dot_dimension_numbers<[1], [0], [0], [1], [0, 0, 1, 1], [], []>} : vector<8x4xbf16>, vector<4x64xbf16>, vector<8x64xf32> -> vector<8x64xf32>
    %13 = vector.extract_strided_slice %4 {offsets = [0, 1], sizes = [4, 16], strides = [1, 1]} : vector<16x18xbf16> to vector<4x16xbf16>
    %14 = vector.extract_strided_slice %4 {offsets = [4, 1], sizes = [4, 16], strides = [1, 1]} : vector<16x18xbf16> to vector<4x16xbf16>
    %15 = vector.extract_strided_slice %4 {offsets = [8, 1], sizes = [4, 16], strides = [1, 1]} : vector<16x18xbf16> to vector<4x16xbf16>
    %16 = vector.extract_strided_slice %4 {offsets = [12, 1], sizes = [4, 16], strides = [1, 1]} : vector<16x18xbf16> to vector<4x16xbf16>
    %17 = tpu.concatenate %13, %14, %15, %16 in 1 : vector<4x16xbf16>, vector<4x16xbf16>, vector<4x16xbf16>, vector<4x16xbf16> -> vector<4x64xbf16>
    %c1 = arith.constant 1 : index
    %c0_6 = arith.constant 0 : index
    %c0_7 = arith.constant 0 : index
    %18 = vector.load %arg2[%c1, %c0_6, %c0_7] : memref<3x8x4xbf16, #tpu.memory_space<vmem>>, vector<1x8x4xbf16>
    %19 = vector.shape_cast %18 : vector<1x8x4xbf16> to vector<8x4xbf16>
    %cst_8 = arith.constant dense<0.000000e+00> : vector<8x64xf32>
    %20 = tpu.matmul %19, %17, %cst_8 {dimension_numbers = #tpu.dot_dimension_numbers<[1], [0], [0], [1], [0, 0, 1, 1], [], []>} : vector<8x4xbf16>, vector<4x64xbf16>, vector<8x64xf32> -> vector<8x64xf32>
    %21 = arith.addf %12, %20 : vector<8x64xf32>
    %22 = vector.extract_strided_slice %4 {offsets = [0, 2], sizes = [4, 16], strides = [1, 1]} : vector<16x18xbf16> to vector<4x16xbf16>
    %23 = vector.extract_strided_slice %4 {offsets = [4, 2], sizes = [4, 16], strides = [1, 1]} : vector<16x18xbf16> to vector<4x16xbf16>
    %24 = vector.extract_strided_slice %4 {offsets = [8, 2], sizes = [4, 16], strides = [1, 1]} : vector<16x18xbf16> to vector<4x16xbf16>
    %25 = vector.extract_strided_slice %4 {offsets = [12, 2], sizes = [4, 16], strides = [1, 1]} : vector<16x18xbf16> to vector<4x16xbf16>
    %26 = tpu.concatenate %22, %23, %24, %25 in 1 : vector<4x16xbf16>, vector<4x16xbf16>, vector<4x16xbf16>, vector<4x16xbf16> -> vector<4x64xbf16>
    %c2 = arith.constant 2 : index
    %c0_9 = arith.constant 0 : index
    %c0_10 = arith.constant 0 : index
    %27 = vector.load %arg2[%c2, %c0_9, %c0_10] : memref<3x8x4xbf16, #tpu.memory_space<vmem>>, vector<1x8x4xbf16>
    %28 = vector.shape_cast %27 : vector<1x8x4xbf16> to vector<8x4xbf16>
    %cst_11 = arith.constant dense<0.000000e+00> : vector<8x64xf32>
    %29 = tpu.matmul %28, %26, %cst_11 {dimension_numbers = #tpu.dot_dimension_numbers<[1], [0], [0], [1], [0, 0, 1, 1], [], []>} : vector<8x4xbf16>, vector<4x64xbf16>, vector<8x64xf32> -> vector<8x64xf32>
    %30 = arith.addf %21, %29 : vector<8x64xf32>
    %c0_12 = arith.constant 0 : index
    %c0_13 = arith.constant 0 : index
    %31 = vector.load %arg3[%c0_12, %c0_13] : memref<8x1xf32, #tpu.memory_space<vmem>>, vector<8x1xf32>
    %32 = vector.broadcast %31 : vector<8x1xf32> to vector<8x64xf32>
    %33 = arith.addf %30, %32 : vector<8x64xf32>
    %cst_14 = arith.constant 0.000000e+00 : f32
    %34 = vector.broadcast %cst_14 : f32 to vector<8x64xf32>
    %35 = arith.cmpf ogt, %33, %34 : vector<8x64xf32>
    %c0_15 = arith.constant 0 : index
    %c0_16 = arith.constant 0 : index
    %36 = vector.load %arg4[%c0_15, %c0_16] : memref<8x1xf32, #tpu.memory_space<vmem>>, vector<8x1xf32>
    %37 = vector.broadcast %36 : vector<8x1xf32> to vector<8x64xf32>
    %38 = arith.mulf %37, %33 : vector<8x64xf32>
    %39 = arith.select %35, %33, %38 : vector<8x64xi1>, vector<8x64xf32>
    %c0_17 = arith.constant 0 : index
    %c0_18 = arith.constant 0 : index
    %40 = vector.load %arg5[%c0_17, %c0_18] : memref<8x64xf32, #tpu.memory_space<vmem>>, vector<8x64xf32>
    tpu.vector_store %arg5[%c0_17, %c0_18], %39 {strides = array<i32>} : memref<8x64xf32, #tpu.memory_space<vmem>>, vector<8x64xf32>,
    return
  }
  func.func @transform_0(%arg0: i32) -> (i32, i32) {
    %c0_i32 = arith.constant 0 : i32
    %c0_i32_0 = arith.constant 0 : i32
    return %arg0, %c0_i32 : i32, i32
  }
  func.func @transform_1(%arg0: i32) -> (i32, i32, i32) {
    %c0_i32 = arith.constant 0 : i32
    %c0_i32_0 = arith.constant 0 : i32
    %c0_i32_1 = arith.constant 0 : i32
    %c0_i32_2 = arith.constant 0 : i32
    return %c0_i32, %c0_i32_0, %c0_i32_1 : i32, i32, i32
  }
  func.func @transform_2(%arg0: i32) -> (i32, i32) {
    %c0_i32 = arith.constant 0 : i32
    %c0_i32_0 = arith.constant 0 : i32
    %c0_i32_1 = arith.constant 0 : i32
    return %c0_i32, %c0_i32_0 : i32, i32
  }
  func.func @transform_3(%arg0: i32) -> (i32, i32) {
    %c0_i32 = arith.constant 0 : i32
    %c0_i32_0 = arith.constant 0 : i32
    %c0_i32_1 = arith.constant 0 : i32
    return %c0_i32, %c0_i32_0 : i32, i32
  }
  func.func @transform_4(%arg0: i32) -> (i32, i32) {
    %c0_i32 = arith.constant 0 : i32
    %c0_i32_0 = arith.constant 0 : i32
    return %arg0, %c0_i32 : i32, i32
  }
}

</mosaic_0001>

<bundles_post_ra>
// kernel: tpu_custom_call.1
= control target key start
LH: loop header
LB: loop body
LE: loop exit
PB: predicated region body
PF: predicated region fallthrough
CT: control target
= control target key end

     0   :  { %9 = vsyncpa [#allocation3], 0  ;;  %s824_s0 = inlined_call_operand.vmem [shape: f32[32,16], index: 0, kind: input, shape index: {}]   ;;  %s825_s1 = inlined_call_operand.vmem [shape: bf16[3,8,4], index: 1, kind: input, shape index: {}]   ;;  %s826_s2 = inlined_call_operand.vmem [shape: f32[8,1], index: 2, kind: input, shape index: {}]   ;;  %s827_s3 = inlined_call_operand.vmem [shape: f32[8,1], index: 3, kind: input, shape index: {}]   ;;  %s828_s4 = inlined_call_operand.hbm [shape: f32[16,64], index: 4, kind: output, shape index: {}]  }
   0x1   :  { %11 = vsyncpa [#allocation3 + $0x1], 0  ;;  %s693_s15 = smov 0   ;;  %s695_s16 = smov 0  }
   0x2   :  { %s697_s17 = smov 0   ;;  %s699_s18 = smov 0  }
   0x3 LB: > { %s714_s19 = sadd.s32 4294967295, %s650_s18   ;;  %s494_s20 = sadd.s32 4294967294, %s650_s18   ;;  %s650_s18 = sphi %s699_s18, %s834_s18   ;;  %s646_s17 = sphi %s697_s17, %s833_s17   ;;  %s642_s16 = sphi %s695_s16, %s832_s16   ;;  %s638_s15 = sphi %s693_s15, %s831_s15  }
   0x4   : > { %s718_s21 = sadd.s32 1, %s650_s18   ;;  %s113_s22 = sadd.s32 1, %s646_s17 }
   0x5   : > { %s110_s23 = ssub.s32 %s650_s18, %s718_s21  ;;  %p123_p0 = scmp.ne.s32.totalorder %s646_s17, %s642_s16 }
   0x6   : > { %p111_p1 = scmp.eq.s32.totalorder %s110_s23, 0  ;;  %p124_p2 = scmp.eq.s32.totalorder %s714_s19, 1 }
   0x7   : > { %p129_p3 = scmp.ne.s32.totalorder %s642_s16, %s638_s15  ;;  %p130_p4 = scmp.eq.s32.totalorder %s494_s20, 1 }
   0x8   : > { %s729_s24 = scalar_select %p111_p1, %s646_s17, %s113_s22  }
   0x9   : > { %p731_p5 = por %p124_p2, %p123_p0  ;;  %p735_p6 = por %p130_p4, %p129_p3 }
   0xa   : > { %p497_p7 = scmp.ge.s32.totalorder %s650_s18, 1  ;;  %p166_p8 = scmp.lt.s32.totalorder %s650_s18, 3 }
   0xc   : > { %p167_p9 = pnand %p497_p7, %p166_p8 }
   0xd   : > { %s499_s27 = sshll.u32 (!%p167_p9), %s714_s19, 1  ;;  %s652_s6 = smov (!%p167_p9), 1  }
   0xe   : > { %170 = sbr.rel (%p167_p9) target bundleno = 497 (0x1f1), region = 36  ;;  %p193_p10 = scmp.lt.s32.totalorder (!%p167_p9), %s499_s27, 3 }
   0xf   : > { %s655_s7 = smov (!%p167_p9), 127   ;;  %s656_s8 = smov (!%p167_p9), 15  }
  0x10   : > { %s657_s9 = smov (!%p167_p9), 126   ;;  %s658_s10 = smov (!%p167_p9), 31  }
  0x11   : > { %s659_s11 = smov (!%p167_p9), 47   ;;  %s660_s12 = smov (!%p167_p9), 16  }
  0x12   : > { %s661_s13 = smov (!%p167_p9), 32   ;;  %s662_s14 = smov (!%p167_p9), 48  }
  0x13   : > { %s836_s27 = smov (!%p193_p10, %s499_s27), 3  ;;  %vm205_vm0 = vcmask 7168   ;;  %v653_v3 = vmov 0.0   ;;  %vm209_vm1 = vcmask 138240   ;;  %vm654_vm2 = vmmov 0   ;;  %s664_s20 = smov 30  }
  0x14   : > { %s500_s28 = sshll.u32 %s836_s27, 3  ;;  %516 = vmatprep.subr.bf16.mxu0 %v653_v3  ;;  %522 = vmatprep.subr.bf16.mxu1 %v653_v3  ;;  %v663_v10 = vmov 0   ;;  %v403_v11 = vld [vmem:[%s826_s2] sm:$0xff]  ;;  %s665_s27 = smov 14   ;;  %vm221_vm3 = vcmask 130048   ;;  %vm224_vm4 = vcmask 261120  }
  0x15   : > { %s196_s5 = scalar_lea.vmem %s824_s0, %s500_s28  ;;  %518 = vmatprep.mubr.msk.bf16.mxu0 %vm654_vm2, %v653_v3  ;;  %524 = vmatprep.mubr.msk.bf16.mxu1 %vm654_vm2, %v653_v3  ;;  %s666_s28 = smov 46   ;;  %v411_v12 = vld [vmem:[%s827_s3] sm:$0xff]  ;;  %vm227_vm5 = vcmask 392192   ;;  %vm252_vm6 = vcmask 1041408   ;;  %vm248_vm7 = vcmask 31744   ;;  %vm419_vm9 = vcmask 523264  }
  0x16   : > { %v199_v0 = vld [vmem:[%s196_s5] sm:$0xff]  ;;  %v200_v1 = vld [vmem:[%s196_s5 + $0x8] sm:$0xff]  ;;  %588 = vset.pattern.permute.xlu0 %v663_v10  ;;  %589 = vset.pattern.permute.xlu1 %v663_v10 }
  0x17   : > { %v201_v2 = vpack.c.bf16 %v200_v1, %v199_v0  ;;  %v501_v24 = vld [vmem:[%s825_s1 + $0x4] sm:$0xf]  ;;  %v230_v30 = vld [vmem:[%s825_s1] sm:$0xf]  ;;  %v504_v38 = vld [vmem:[%s825_s1 + $0x8] sm:$0xf] }
  0x19   : > { %203 = vrot.lane.b32.xlu0 %v201_v2, %s652_s6 }
  0x8b   : > { %v204_v4 = vpop.permute.xlu0 %203 }
  0x8c   : > { %v208_v5 = vsel %vm205_vm0, 0, %v204_v4 }
  0x8d   : > { %v210_v6 = vsel %vm209_vm1, %v208_v5, 0 }
  0x8e   : > { %231 = vrot.lane.b32.xlu0 %v210_v6, %s655_s7  ;;  %v212_v7 = vrot.slane %v210_v6, 2  ;;  %v215_v8 = vrot.slane %v210_v6, 4  ;;  %v218_v9 = vrot.slane %v210_v6, 6 }
  0x90   : > { %233 = vrot.lane.b32.xlu1 %v212_v7, %s656_s8 }
  0x92   : > { %340 = vrot.lane.b32.xlu0 %v210_v6, %s657_s9 }
  0x94   : > { %235 = vrot.lane.b32.xlu1 %v215_v8, %s658_s10 }
  0x96   : > { %237 = vrot.lane.b32.xlu0 %v218_v9, %s659_s11  ;;  %s189_s11 = sand.u32 1, %s642_s16  }
  0x98   : > { %213 = vrot.lane.b32.xlu1 %v212_v7, %s660_s12  ;;  %s498_s12 = sshll.u32 %s189_s11, 3 }
  0x9a   : > { %216 = vrot.lane.b32.xlu0 %v215_v8, %s661_s13  ;;  %s507_s13 = sshll.u32 %s714_s19, 7  ;;  %s667_s19 = smov [#allocation2]  }
  0x9b   : > { %s594_s30 = sshll.u32 %s667_s19, 4  ;;  %s595_s30 = int_to_ptr.vmem [resolvable:$false] %s594_s30 }
  0x9c   : > { %219 = vrot.lane.b32.xlu1 %v218_v9, %s662_s14  ;;  %s191_s14 = scalar_lea.vmem [#allocation2], %s498_s12  ;;  %s596_s5 = scalar_lea.vmem %s595_s30, 256 }
  0x9e   : > { %344 = vrot.lane.b32.xlu0 %v215_v8, %s664_s20  ;;  %s435_s20 = sshll.u32 %s191_s14, 4  ;;  %s436_s20 = int_to_ptr.vmem [resolvable:$true] %s435_s20 }
  0x9f   : > { %s590_s29 = scalar_lea.vmem %s436_s20, 128  ;;  %p597_p0 = scmp.lt.s32.totalorder %s436_s20, %s595_s30 }
  0xa0   : > { %342 = vrot.lane.b32.xlu1 %v212_v7, %s665_s27  ;;  %s789_s27 = scalar_lea.hbm %s828_s4, %s507_s13  ;;  %p591_p11 = scmp.ne.s32.totalorder %s436_s20, %s590_s29 }
  0xa1   : > { %p598_p1 = scmp.lt.s32.totalorder %s596_s5, %s590_s29 }
  0xa2   : > { %406 = vperm.xlu0 %588, %v403_v11   ;;  %p592_p12 = pnand %p591_p11, %p731_p5 }
  0xa3   : > { %p599_p2 = por %p598_p1, %p597_p0 }
  0xa4   : > { %346 = vrot.lane.b32.xlu1 %v218_v9, %s666_s28  ;;  %s422_s28 = scalar_lea.sflag [#allocation3], %s189_s11  ;;  %p593_p13 = pneg %p592_p12 }
  0xa6   : > { %p600_p3 = pnand %p599_p2, %p593_p13 }
  0xa8   : > { %414 = vperm.xlu1 %589, %v411_v12  }
 0x100   : > { %v232_v13 = vpop.permute.xlu0 %231 }
 0x102   : > { %v234_v14 = vpop.permute.xlu1 %233 }
 0x103   : > { %v241_v16 = vsel %vm221_vm3, %v232_v13, %v234_v14 }
 0x104   : > { %v341_v15 = vpop.permute.xlu0 %340 }
 0x106   : > { %v236_v17 = vpop.permute.xlu1 %235 }
 0x107   : > { %v243_v18 = vsel %vm224_vm4, %v241_v16, %v236_v17 }
 0x108   : > { %v238_v19 = vpop.permute.xlu0 %237 }
 0x109   : > { %v245_v20 = vsel %vm227_vm5, %v243_v18, %v238_v19 }
 0x10a   : > { %v214_v21 = vpop.permute.xlu1 %213  ;;  %v253_v22 = vsel %vm252_vm6, %v245_v20, 0 }
 0x10b   : > { %v223_v23 = vsel %vm221_vm3, %v210_v6, %v214_v21  ;;  %517 = vmatpush3.bf16.msra.mxu0 %v253_v22 }
 0x10c   : > { %v217_v25 = vpop.permute.xlu0 %216  ;;  %528 = vmatprep.subr.bf16.mxu0 %v653_v3 }
 0x10d   : > { %v226_v26 = vsel %vm224_vm4, %v223_v23, %v217_v25 }
 0x10e   : > { %v220_v27 = vpop.permute.xlu1 %219  ;;  %519 = vmatmul.mubr.msk.bf16.vlgmr.msra.gmra.mxu0 %vm248_vm7, %v501_v24 }
 0x10f   : > { %v229_v28 = vsel %vm227_vm5, %v226_v26, %v220_v27  ;;  %530 = vmatprep.mubr.msk.bf16.mxu0 %vm654_vm2, %v653_v3 }
 0x110   : > { %v298_v29 = vsel %vm252_vm6, %v229_v28, 0  ;;  %v345_v33 = vpop.permute.xlu0 %344 }
 0x111   : > { %523 = vmatpush3.bf16.msra.mxu1 %v298_v29 }
 0x112   : > { %v343_v31 = vpop.permute.xlu1 %342 }
 0x113   : > { %v350_v32 = vsel %vm221_vm3, %v341_v15, %v343_v31 }
 0x114   : > { %525 = vmatmul.mubr.msk.bf16.vlgmr.msra.gmra.mxu1 %vm248_vm7, %v230_v30  ;;  %v352_v34 = vsel %vm224_vm4, %v350_v32, %v345_v33 }
 0x116   : > { %v347_v35 = vpop.permute.xlu1 %346 }
 0x117   : > { %v354_v36 = vsel %vm227_vm5, %v352_v34, %v347_v35 }
 0x118   : > { %v360_v37 = vsel %vm252_vm6, %v354_v36, 0 }
 0x119   : > { %529 = vmatpush3.bf16.msra.mxu0 %v360_v37 }
 0x11c   : > { %531 = vmatmul.mubr.msk.bf16.vlgmr.msra.gmra.mxu0 %vm248_vm7, %v504_v38 }
 0x11d   : > { %v407_v49 = vpop.permute.xlu0 %406 }
 0x123   : > { %v415_v52 = vpop.permute.xlu1 %414 }
 0x1ce   : > { %v289_v39 = vpop.f32.mrf.mxu0 }
 0x1d0   : > { %v520_v40 = vpop.f32.mrf.mxu0 }
 0x1d2   : > { %v292_v41 = vpop.f32.mrf.mxu0 }
 0x1d4   : > { %v521_v42 = vpop.f32.mrf.mxu0  ;;  %v334_v43 = vpop.f32.mrf.mxu1 }
 0x1d5   : > { %v335_v47 = vadd.f32 %v334_v43, %v289_v39 }
 0x1d6   : > { %v526_v44 = vpop.f32.mrf.mxu1 }
 0x1d8   : > { %v337_v45 = vpop.f32.mrf.mxu1 }
 0x1da   : > { %v527_v46 = vpop.f32.mrf.mxu1 }
 0x1dc   : > { %v396_v48 = vpop.f32.mrf.mxu0 }
 0x1dd   : > { %v402_v50 = vadd.f32 %v396_v48, %v335_v47 }
 0x1de   : > { %v532_v51 = vpop.f32.mrf.mxu0 }
 0x1df   : > { %v409_v53 = vadd.f32 %v407_v49, %v402_v50 }
 0x1e0   : > { %v399_v54 = vpop.f32.mrf.mxu0 }
 0x1e1   : > { %vm410_vm8 = vcmp.gt.f32.partialorder %v409_v53, 0.0  ;;  %v417_v55 = vmul.f32 %v415_v52, %v409_v53 }
 0x1e2   : > { %v533_v56 = vpop.f32.mrf.mxu0 }
 0x1e3   : > { %v418_v57 = vsel %vm410_vm8, %v409_v53, %v417_v55 }
 0x1e4   : > { %420 = vst.msk [vmem:[%s191_s14] sm:$0xff] %vm419_vm9, %v418_v57 }
 0x1e5   : > { %603 = shalt.err (!%p600_p3)
}
 0x1e6   : > { %s604_s6 = scalar_lea.hbm %s789_s27, 128  ;;  %s608_s9 = scalar_lea.hbm %s828_s4, 256 }
 0x1e7   : > { %p605_p4 = scmp.ne.s32.totalorder %s789_s27, %s604_s6  ;;  %p609_p9 = scmp.lt.s32.totalorder %s789_s27, %s828_s4 }
 0x1e8   : > { %p610_p10 = scmp.lt.s32.totalorder %s608_s9, %s604_s6 }
 0x1e9   : > { %p606_p7 = pnand %p605_p4, %p731_p5 }
 0x1ea   : > { %p611_p11 = por %p610_p10, %p609_p9 }
 0x1eb   : > { %p607_p8 = pneg %p606_p7 }
 0x1ed   : > { %p612_p12 = pnand %p611_p11, %p607_p8 }
 0x1ef   : > { %615 = shalt.err (!%p612_p12)
}
 0x1f0   : > { %534 = dma.vmem_to_hbm [thread:$0]  (%p731_p5), %s436_s20, 128, %s789_s27, %s422_s28  }
 0x1f1 PF: > { %p540_p13 = scmp.ge.s32.totalorder %s650_s18, 2  ;;  %s447_s12 = sand.u32 1, %s638_s15  }
 0x1f2   : > { %s448_s13 = scalar_lea.sflag [#allocation3], %s447_s12 }
 0x1f3   : > { %p537_p0 = pnand %p540_p13, %p735_p6 }
 0x1f5   : > { %p538_p1 = pneg %p537_p0 }
 0x1f7   : > { %633 = dma.done.wait (%p538_p1), %s448_s13, 128  }
 0x1f8   : > { %635 = vsyncadd (%p538_p1), %s448_s13, 4294967168  ;;  %p14_p2 = scmp.ge.s32.totalorder %s718_s21, 4   ;;  %s831_s15 = smov %s642_s16 }
 0x1f9   : > { %s832_s16 = smov %s646_s17  ;;  %s833_s17 = smov %s729_s24 }
 0x1fa   : > { %s834_s18 = smov %s718_s21  ;;  %16 = sbr.rel (!%p14_p2) target bundleno = 3 (0x3), region = 73 }
 0x1ff   :  { %453 = vsyncpa [#allocation3], 1 }
 0x200   :  { %455 = vsyncpa [#allocation3 + $0x1], 1 }

</bundles_post_ra>
